<compile_context>
chip_gen: v5e
topology: v5e:2x2
jax: 0.10.0
libtpu: 0.0.40
codegen_flags: <defaults>
</compile_context>

<pallas_src>
import functools

import numpy as np
import jax
import jax.numpy as jnp
from jax import lax
from jax.experimental import pallas as pl
from jax.experimental.pallas import tpu as pltpu


# ----------------------------- parameter builders -----------------------------

def dct_mat(size):
    m = [[(np.sqrt(1.0 / size) if i == 0 else np.sqrt(2.0 / size))
          * np.cos((j + 0.5) * np.pi * i / size)
          for j in range(size)] for i in range(size)]
    return np.asarray(m, dtype=np.float32)


def generate_filter(start, end, size):
    # standard F3-Net band filter: 1 where start < i+j <= end, else 0
    return np.asarray(
        [[0.0 if (i + j) > end or (i + j) <= start else 1.0 for j in range(size)]
         for i in range(size)],
        dtype=np.float32)


# --------------------------------- the kernel ---------------------------------

def lfs_kernel(p_ref, kmat_ref, fmat_ref, o_ref, *, chunk):
    # p_ref    : (Pp, tl)  pixel-major windows (Pp = S*S padded to mult. of 8);
    #            lane axis = patch index (lane-dense).
    # kmat_ref : (Pp, Pp)  zero-padded kron(D, D): kmat @ p == vec(D P D^T) per col.
    # fmat_ref : (Mp, Pp)  zero-padded band filters, 1/ft_num & 1/ln(10) folded in.
    # o_ref    : (Mp, tl)  per-band, per-window log-spectrum sums (lane-dense).
    #
    # Lane sub-loop: dct -> log -> band-reduce per `chunk` lanes so the (Pp, tl)
    # intermediates never materialize at full tile width.
    kmat = kmat_ref[...]
    fmat = fmat_ref[...]
    nchunks = p_ref.shape[1] // chunk

    def body(c, carry):
        j = pl.multiple_of(c * chunk, chunk)
        p = p_ref[:, pl.ds(j, chunk)]                                   # (Pp, ck)
        dct = jnp.dot(kmat, p, preferred_element_type=jnp.float32)      # (Pp, ck)
        z = jnp.log(jnp.abs(dct) + 1e-15)        # ln; 1/ln(10) folded into fmat
        o_ref[:, pl.ds(j, chunk)] = jnp.dot(fmat, z,
                                            preferred_element_type=jnp.float32)
        return carry

    lax.fori_loop(0, nchunks, body, 0, unroll=(nchunks <= 8))


# --------------------------------- the wrapper ---------------------------------

def lfs_head_forward(x, learnable, *, window_size, M, tl=32768):
    """Pallas implementation of LFS_Head.forward.

    x         : (N, 3, H, W) float32, NCHW (PyTorch convention)
    learnable : (M, S, S)    float32, the Filter.learnable parameters
    returns   : (N, M, size_after_h, size_after_w) float32
    """
    N, C, H, W = x.shape
    S = window_size
    assert C == 3

    # gray conversion + rescale (elementwise glue)
    x_gray = 0.299 * x[:, 0] + 0.587 * x[:, 1] + 0.114 * x[:, 2]      # (N, H, W)
    xg = ((x_gray + 1.0) * 122.5).astype(jnp.float32)

    sa_h = (H - S + 8) // 2 + 1
    sa_w = (W - S + 8) // 2 + 1
    # TODO(synk): the original module asserts size_after == 149 (299x299 inputs);
    # that shape-only assert is dropped so small synthetic shapes run.

    P = S * S
    Pp = ((P + 7) // 8) * 8                      # 36 -> 40: dense sublane groups
    Mp = max(8, ((M + 7) // 8) * 8)              # 4  -> 8 : dense output stores

    # nn.Unfold(kernel=(S,S), stride=2, padding=4), built pixel-major via S*S
    # cheap strided slices (no XLA gather):
    #   row u*S+v of `pt` holds pixel (u, v) of every window,
    #   columns run over (n, oh, ow) row-major.
    xp = jnp.pad(xg, ((0, 0), (4, 4), (4, 4)))
    cols = [xp[:, u:u + 2 * sa_h - 1:2, v:v + 2 * sa_w - 1:2].reshape(-1)
            for u in range(S) for v in range(S)]
    cols += [jnp.zeros_like(cols[0])] * (Pp - P)          # zero sublane-pad rows
    pt = jnp.stack(cols, axis=0).astype(jnp.float32)      # (Pp, N*L)

    # constant matrices (zero-padded; padded rows/cols contribute exactly 0)
    D = dct_mat(S)
    kmat_np = np.zeros((Pp, Pp), dtype=np.float32)
    kmat_np[:P, :P] = np.kron(D, D)
    kmat = jnp.asarray(kmat_np)                                        # (Pp, Pp)

    bases = np.stack([generate_filter(S * 2.0 / M * i, S * 2.0 / M * (i + 1), S)
                      for i in range(M)])                              # (M, S, S)
    ft_num = bases.reshape(M, -1).sum(axis=1).astype(np.float32)       # (M,)
    filt = jnp.asarray(bases) + (2.0 * jax.nn.sigmoid(learnable) - 1.0)   # norm_sigma
    fmat_core = (filt / jnp.asarray(ft_num)[:, None, None]).reshape(M, P)
    fmat_core = fmat_core * np.float32(1.0 / np.log(10.0))             # log10 -> ln
    fmat = jnp.zeros((Mp, Pp), jnp.float32).at[:M, :P].set(fmat_core)  # (Mp, Pp)

    # lane-axis tiling: big tiles amortize per-step overhead; keep >= 2 grid
    # steps when possible (v7x megacore sharding), rebalance to cut pad waste.
    Ltot = N * sa_h * sa_w
    lane = 128
    tl_eff = max(lane, (int(tl) // lane) * lane)
    Lr = pl.cdiv(Ltot, lane) * lane
    tl_eff = min(tl_eff, Lr)
    if Lr >= 2 * lane:
        tl_eff = min(tl_eff, max(lane, pl.cdiv(Ltot, 2 * lane) * lane))
    steps = pl.cdiv(Lr, tl_eff)
    tl_eff = pl.cdiv(pl.cdiv(Ltot, steps), lane) * lane   # rebalance, keep 128-mult
    Lpad = steps * tl_eff
    pt = jnp.pad(pt, ((0, 0), (0, Lpad - Ltot)))

    # in-kernel lane chunk: largest 128-multiple divisor of tl_eff that is <= 512
    if tl_eff % 512 == 0:
        chunk = 512
    elif tl_eff % 256 == 0:
        chunk = 256
    else:
        chunk = 128

    out = pl.pallas_call(
        functools.partial(lfs_kernel, chunk=chunk),
        out_shape=jax.ShapeDtypeStruct((Mp, Lpad), jnp.float32),
        grid_spec=pltpu.PrefetchScalarGridSpec(
            num_scalar_prefetch=0,
            grid=(steps,),
            in_specs=[
                pl.BlockSpec((Pp, tl_eff), lambda i: (0, i)),   # windows (lane-tiled)
                pl.BlockSpec((Pp, Pp), lambda i: (0, 0)),       # kron(D, D), resident
                pl.BlockSpec((Mp, Pp), lambda i: (0, 0)),       # band filters, resident
            ],
            out_specs=pl.BlockSpec((Mp, tl_eff), lambda i: (0, i)),
        ),
        compiler_params=pltpu.CompilerParams(
            dimension_semantics=("parallel",),
            vmem_limit_bytes=32 * 1024 * 1024,
        ),
    )(pt, kmat, fmat)

    out = out[:M, :Ltot].reshape(M, N, sa_h, sa_w)
    return jnp.transpose(out, (1, 0, 2, 3))                           # (N, M, s, s)


# ------------------------------ pure-JAX reference ------------------------------

def lfs_head_reference(x, learnable, *, window_size, M):
    N, C, H, W = x.shape
    S = window_size
    x_gray = 0.299 * x[:, 0] + 0.587 * x[:, 1] + 0.114 * x[:, 2]
    xg = (x_gray + 1.0) * 122.5
    sa_h = (H - S + 8) // 2 + 1
    sa_w = (W - S + 8) // 2 + 1
    xp = jnp.pad(xg, ((0, 0), (4, 4), (4, 4)))
    ih = jnp.arange(sa_h)[:, None] * 2 + jnp.arange(S)[None, :]
    iw = jnp.arange(sa_w)[:, None] * 2 + jnp.arange(S)[None, :]
    patches = xp[:, ih[:, None, :, None], iw[None, :, None, :]]       # (N,sh,sw,S,S)

    D = jnp.asarray(dct_mat(S))
    x_dct = jnp.einsum('ua,nhwab,vb->nhwuv', D, patches, D,
                       precision=jax.lax.Precision.HIGHEST)
    z = jnp.log10(jnp.abs(x_dct) + 1e-15)

    bases = np.stack([generate_filter(S * 2.0 / M * i, S * 2.0 / M * (i + 1), S)
                      for i in range(M)])
    ft_num = bases.reshape(M, -1).sum(axis=1).astype(np.float32)
    filt = jnp.asarray(bases) + (2.0 * jax.nn.sigmoid(learnable) - 1.0)
    filt = filt / jnp.asarray(ft_num)[:, None, None]                  # (M, S, S)

    y = jnp.einsum('nhwuv,muv->nmhw', z, filt,
                   precision=jax.lax.Precision.HIGHEST)
    return y


# ------------------------------------ main ------------------------------------

if __name__ == "__main__":
    window_size = 6
    M = 4
    N, H, W = 2, 18, 18   # small synthetic shape; size_after = (18-6+8)//2 + 1 = 11

    key = jax.random.PRNGKey(0)
    kx, kl = jax.random.split(key)
    x = jax.random.normal(kx, (N, 3, H, W), dtype=jnp.float32)
    # Filter.learnable ~ Normal(0, 0.1), deterministic via PRNGKey
    learnable = 0.1 * jax.random.normal(kl, (M, window_size, window_size),
                                        dtype=jnp.float32)

    out = lfs_head_forward(x, learnable, window_size=window_size, M=M)
    out = jax.block_until_ready(out)

    ref = lfs_head_reference(x, learnable, window_size=window_size, M=M)
    ref = jax.block_until_ready(ref)

    assert out.shape == (N, M, 11, 11), out.shape
    np.testing.assert_allclose(np.asarray(out), np.asarray(ref), rtol=5e-3, atol=5e-3)

    print("KERNEL_OK")
</pallas_src>

<mosaic_0001>
module attributes {stable_mosaic.version = 11 : i64} {
  func.func @lfs_kernel(%arg0: i32, %arg1: memref<40x128xf32, #tpu.memory_space<vmem>>, %arg2: memref<40x40xf32, #tpu.memory_space<vmem>>, %arg3: memref<8x40xf32, #tpu.memory_space<vmem>>, %arg4: memref<8x128xf32, #tpu.memory_space<vmem>>) attributes {dimension_semantics = [#tpu.dimension_semantics<parallel>], iteration_bounds = array<i64: 2>, scalar_prefetch = 0 : i64, scratch_operands = 0 : i64, tpu.core_type = #tpu.core_type<tc>, window_params = [{transform_indices = @transform_0, window_bounds = array<i64: 40, 128>}, {pipeline_mode = #tpu.pipeline_mode<synchronous>, transform_indices = @transform_1, window_bounds = array<i64: 40, 40>}, {pipeline_mode = #tpu.pipeline_mode<synchronous>, transform_indices = @transform_2, window_bounds = array<i64: 8, 40>}, {transform_indices = @transform_3, window_bounds = array<i64: 8, 128>}]} {
    %c0 = arith.constant 0 : index
    %c0_0 = arith.constant 0 : index
    %0 = vector.load %arg2[%c0, %c0_0] : memref<40x40xf32, #tpu.memory_space<vmem>>, vector<40x40xf32>
    %c0_1 = arith.constant 0 : index
    %c0_2 = arith.constant 0 : index
    %1 = vector.load %arg3[%c0_1, %c0_2] : memref<8x40xf32, #tpu.memory_space<vmem>>, vector<8x40xf32>
    %c0_i32 = arith.constant 0 : i32
    %c128_i32 = arith.constant 128 : i32
    %2 = arith.muli %c0_i32, %c128_i32 : i32
    %3 = tpu.assume_multiple %2, 128 : i32
    %c0_3 = arith.constant 0 : index
    %4 = arith.index_cast %3 : i32 to index
    %5 = vector.load %arg1[%c0_3, %4] : memref<40x128xf32, #tpu.memory_space<vmem>>, vector<40x128xf32>
    %cst = arith.constant dense<0.000000e+00> : vector<40x128xf32>
    %6 = tpu.matmul %0, %5, %cst {dimension_numbers = #tpu.dot_dimension_numbers<[1], [0], [0], [1], [0, 0, 1, 1], [], []>} : vector<40x40xf32>, vector<40x128xf32>, vector<40x128xf32> -> vector<40x128xf32>
    %7 = math.absf %6 : vector<40x128xf32>
    %cst_4 = arith.constant 1.000000e-15 : f32
    %8 = vector.broadcast %cst_4 : f32 to vector<40x128xf32>
    %9 = arith.addf %7, %8 : vector<40x128xf32>
    %10 = math.log %9 : vector<40x128xf32>
    %cst_5 = arith.constant dense<0.000000e+00> : vector<8x128xf32>
    %11 = tpu.matmul %1, %10, %cst_5 {dimension_numbers = #tpu.dot_dimension_numbers<[1], [0], [0], [1], [0, 0, 1, 1], [], []>} : vector<8x40xf32>, vector<40x128xf32>, vector<8x128xf32> -> vector<8x128xf32>
    %c0_6 = arith.constant 0 : index
    %12 = arith.index_cast %3 : i32 to index
    %13 = vector.load %arg4[%c0_6, %12] : memref<8x128xf32, #tpu.memory_space<vmem>>, vector<8x128xf32>
    tpu.vector_store %arg4[%c0_6, %12], %11 {strides = array<i32>} : memref<8x128xf32, #tpu.memory_space<vmem>>, vector<8x128xf32>,
    %c1_i32 = arith.constant 1 : i32
    return
  }
  func.func @transform_0(%arg0: i32) -> (i32, i32) {
    %c0_i32 = arith.constant 0 : i32
    %c0_i32_0 = arith.constant 0 : i32
    return %c0_i32, %arg0 : i32, i32
  }
  func.func @transform_1(%arg0: i32) -> (i32, i32) {
    %c0_i32 = arith.constant 0 : i32
    %c0_i32_0 = arith.constant 0 : i32
    %c0_i32_1 = arith.constant 0 : i32
    return %c0_i32, %c0_i32_0 : i32, i32
  }
  func.func @transform_2(%arg0: i32) -> (i32, i32) {
    %c0_i32 = arith.constant 0 : i32
    %c0_i32_0 = arith.constant 0 : i32
    %c0_i32_1 = arith.constant 0 : i32
    return %c0_i32, %c0_i32_0 : i32, i32
  }
  func.func @transform_3(%arg0: i32) -> (i32, i32) {
    %c0_i32 = arith.constant 0 : i32
    %c0_i32_0 = arith.constant 0 : i32
    return %c0_i32, %arg0 : i32, i32
  }
}

</mosaic_0001>

<bundles_post_ra>
// kernel: tpu_custom_call.1
= control target key start
LH: loop header
LB: loop body
LE: loop exit
PB: predicated region body
PF: predicated region fallthrough
CT: control target
= control target key end

     0   :  { %8 = vsyncpa [#allocation3], 0  ;;  %s881_s0 = inlined_call_operand.hbm [shape: f32[40,256], index: 0, kind: input, shape index: {}]   ;;  %s882_s1 = inlined_call_operand.hbm [shape: f32[40,40], index: 1, kind: input, shape index: {}]   ;;  %s883_s2 = inlined_call_operand.hbm [shape: f32[8,40], index: 2, kind: input, shape index: {}]   ;;  %s884_s3 = inlined_call_operand.hbm [shape: f32[8,256], index: 3, kind: output, shape index: {}]  }
   0x1   :  { %10 = vsyncpa [#allocation3 + $0x1], 0 }
   0x2   :  { %11 = vsyncpa [#allocation6], 0 }
   0x3   :  { %12 = vsyncpa [#allocation4], 0 }
   0x4   :  { %14 = vsyncpa [#allocation4 + $0x1], 0  ;;  %s728_s12 = smov 0   ;;  %s730_s13 = smov 0  }
   0x5   :  { %s732_s14 = smov 0   ;;  %s734_s15 = smov 0  }
   0x6 LB: > { %s749_s16 = sadd.s32 4294967295, %s701_s15   ;;  %s429_s17 = sadd.s32 4294967294, %s701_s15   ;;  %s701_s15 = sphi %s734_s15, %s896_s15   ;;  %s697_s14 = sphi %s732_s14, %s895_s14   ;;  %s693_s13 = sphi %s730_s13, %s894_s13   ;;  %s689_s12 = sphi %s728_s12, %s893_s12  }
   0x7   : > { %p40_p0 = scmp.ne.s32.totalorder %s693_s13, %s689_s12  ;;  %p41_p1 = scmp.eq.s32.totalorder %s749_s16, 0 }
   0x8   : > { %p106_p2 = scmp.eq.s32.totalorder %s749_s16, 1  ;;  %p112_p3 = scmp.eq.s32.totalorder %s429_s17, 1 }
   0x9   : > { %p758_p4 = por %p41_p1, %p40_p0  ;;  %p430_p5 = scmp.ge.s32.totalorder %s701_s15, 1 }
   0xa   : > { %p763_p6 = por %p112_p3, %p40_p0  ;;  %p119_p7 = scmp.lt.s32.totalorder %s701_s15, 3 }
   0xb   : > { %s130_s22 = sshll.u32 %s882_s1, 4  ;;  %s703_s24 = smov [#allocation5]   ;;  %s131_s22 = int_to_ptr.hbm [resolvable:$true] %s130_s22 }
   0xc   : > { %p771_p8 = pnand %p430_p5, %p119_p7  ;;  %s132_s25 = sshll.u32 %s703_s24, 4  ;;  %s133_s25 = int_to_ptr.vmem [resolvable:$true] %s132_s25 }
   0xd   : > { %s145_s28 = sshll.u32 %s883_s2, 4  ;;  %s885_s29 = smov 128   ;;  %s146_s28 = int_to_ptr.hbm [resolvable:$true] %s145_s28 }
   0xe   : > { %p473_p9 = pneg %p771_p8  ;;  %s705_s30 = smov 8  }
   0xf   : > { %s706_s4 = smov [#allocation7]   ;;  %s787_s6 = sadd.s32 1, %s701_s15  }
  0x10   : > { %p474_p10 = pnand %p473_p9, %p41_p1  ;;  %s147_s5 = sshll.u32 %s706_s4, 4  ;;  %s148_s5 = int_to_ptr.vmem [resolvable:$true] %s147_s5 }
  0x11   : > { %s27_s7 = sadd.s32 1, %s697_s14  ;;  %s24_s8 = ssub.s32 %s701_s15, %s787_s6 }
  0x12   : > { %476 = dma.hbm_to_vmem [thread:$0]  (!%p474_p10), %s131_s22, 640, %s133_s25, [#allocation6], %s885_s29, %s885_s29, %s705_s30  }
  0x13   : > { %479 = dma.hbm_to_vmem [thread:$0]  (!%p474_p10), %s146_s28, 128, %s148_s5, [#allocation6]  }
  0x14   : > { %p34_p12 = scmp.ne.s32.totalorder %s697_s14, %s693_s13  ;;  %p25_p13 = scmp.eq.s32.totalorder %s24_s8, 0 }
  0x15   : > { %p35_p0 = scmp.eq.s32.totalorder %s701_s15, 0  ;;  %p490_p5 = scmp.lt.s32.totalorder %s701_s15, 2 }
  0x16   : > { %p797_p3 = por %p106_p2, %p34_p12  ;;  %s158_s11 = sand.u32 1, %s697_s14  }
  0x17   : > { %s803_s10 = scalar_select %p25_p13, %s697_s14, %s27_s7  }
  0x18   : > { %p36_p7 = por %p35_p0, %p34_p12  ;;  %s459_s17 = smul.u32 40, %s158_s11 }
  0x19   : > { %s434_s20 = sshll.u32 %s701_s15, 3  ;;  %s159_s4 = scalar_lea.sflag [#allocation3], %s158_s11 }
  0x1a   : > { %p807_p9 = pnand %p490_p5, %p36_p7  ;;  %s166_s25 = scalar_lea.hbm %s881_s0, %s434_s20 }
  0x1b   : > { %s167_s26 = sshll.u32 %s166_s25, 4  ;;  %s162_s27 = scalar_lea.vmem [#allocation2], %s459_s17  ;;  %s168_s26 = int_to_ptr.hbm [resolvable:$true] %s167_s26 }
  0x1c   : > { %s169_s28 = sshll.u32 %s162_s27, 4  ;;  %s601_s5 = sshra.s32 %s168_s26, 4  ;;  %s170_s28 = int_to_ptr.vmem [resolvable:$true] %s169_s28  ;;  %s602_s5 = int_to_ptr.hbm [resolvable:$true] %s601_s5 }
  0x1d   : > { %s603_s7 = scalar_lea.hbm %s602_s5, 40  ;;  %p605_p10 = pneg %p807_p9 }
  0x1e   : > { %p604_p2 = scmp.ne.s32.totalorder %s602_s5, %s603_s7  ;;  %s608_s22 = scalar_lea.hbm %s881_s0, 80 }
  0x1f   : > { %p609_p0 = scmp.lt.s32.totalorder %s602_s5, %s881_s0  ;;  %p610_p5 = scmp.lt.s32.totalorder %s608_s22, %s603_s7 }
  0x20   : > { %p606_p12 = pnand %p605_p10, %p604_p2 }
  0x21   : > { %p611_p7 = por %p610_p5, %p609_p0 }
  0x22   : > { %p607_p13 = pneg %p606_p12 }
  0x24   : > { %p612_p11 = pnand %p611_p7, %p607_p13 }
  0x26   : > { %615 = shalt.err (!%p612_p11)
}
  0x27   : > { %s707_s11 = smov 256   ;;  %s891_s17 = smov 128  }
  0x28   : > { %483 = dma.hbm_to_vmem [thread:$0]  (!%p807_p9), %s168_s26, 640, %s170_s28, %s159_s4, %s707_s11, %s891_s17, %s705_s30  }
  0x29   : > { %181 = sbr.rel (%p771_p8) target bundleno = 350 (0x15e), region = 32  ;;  %s829_s29 = sand.u32 (!%p771_p8), 1, %s693_s13  }
  0x2a   : > { %s460_s25 = smul.u32 (!%p771_p8), 40, %s829_s29  ;;  %s184_s27 = scalar_lea.sflag (!%p771_p8), [#allocation3], %s829_s29 }
  0x2c   : > { %s187_s5 = scalar_lea.vmem (!%p771_p8), [#allocation2], %s460_s25 }
  0x2e   : > { %676 = dma.done.wait (%p758_p4), %s184_s27, 640  }
  0x2f   : > { %678 = vsyncadd (%p758_p4), %s184_s27, 4294966656 }
  0x30   : > { %680 = dma.done.wait (%p41_p1), [#allocation6], 768  }
  0x31   : > { %682 = vsyncadd (%p41_p1), [#allocation6], 4294966528  ;;  %v231_v0 = vld [vmem:[%s187_s5 + $0x20] sm:$0xff]  ;;  %v230_v1 = vld [vmem:[%s187_s5 + $0x18] sm:$0xff]  ;;  %vm232_vm0 = vcmask 326656   ;;  %s438_s18 = sshll.u32 %s829_s29, 3 }
  0x32   : > { %450 = vmatpush.msra.mxu3 %v231_v0  ;;  %259 = vmatpush.msra.mxu0 %v231_v0  ;;  %v229_v2 = vld [vmem:[%s187_s5 + $0x10] sm:$0xff]  ;;  %v228_v3 = vld [vmem:[%s187_s5 + $0x8] sm:$0xff]  ;;  %v227_v4 = vld [vmem:[%s187_s5] sm:$0xff]  ;;  %s446_s23 = sshll.u32 %s749_s16, 3  ;;  %s220_s28 = scalar_lea.vmem [#allocation8], %s438_s18 }
  0x33   : > { %449 = vmatpush.msra.mxu2 %v231_v0  ;;  %v224_v5 = vld [vmem:[#allocation5 + $0x18] sm:$0xff]  ;;  %v221_v6 = vld [vmem:[#allocation5] sm:$0xff]  ;;  %v223_v7 = vld [vmem:[#allocation5 + $0x10] sm:$0xff]  ;;  %s335_s26 = scalar_lea.hbm %s884_s3, %s446_s23  ;;  %s337_s4 = sshll.u32 %s220_s28, 4  ;;  %s338_s4 = int_to_ptr.vmem [resolvable:$true] %s337_s4 }
  0x34   : > { %452 = vmatpush.msra.mxu3 %v230_v1  ;;  %260 = vmatpush.msra.mxu0 %v230_v1  ;;  %v225_v8 = vld [vmem:[#allocation5 + $0x20] sm:$0xff]  ;;  %v222_v9 = vld [vmem:[#allocation5 + $0x8] sm:$0xff]  ;;  %s339_s7 = sshll.u32 %s335_s26, 4  ;;  %s325_s8 = scalar_lea.sflag [#allocation4], %s829_s29  ;;  %s340_s7 = int_to_ptr.hbm [resolvable:$true] %s339_s7 }
  0x35   : > { %451 = vmatpush.msra.mxu2 %v230_v1  ;;  %v226_v35 = vld [vmem:[#allocation7] sm:$0xff]  ;;  %s645_s22 = sshra.s32 %s340_s7, 4  ;;  %s651_s11 = scalar_lea.hbm %s884_s3, 16  ;;  %s646_s22 = int_to_ptr.hbm [resolvable:$true] %s645_s22 }
  0x36   : > { %454 = vmatpush.msra.mxu3 %v229_v2  ;;  %261 = vmatpush.msra.mxu0 %v229_v2  ;;  %s647_s24 = scalar_lea.hbm %s646_s22, 8  ;;  %p652_p11 = scmp.lt.s32.totalorder %s646_s22, %s884_s3 }
  0x37   : > { %453 = vmatpush.msra.mxu2 %v229_v2  ;;  %p648_p1 = scmp.ne.s32.totalorder %s646_s22, %s647_s24  ;;  %p653_p9 = scmp.lt.s32.totalorder %s651_s11, %s647_s24 }
  0x38   : > { %456 = vmatpush.msra.mxu3 %v228_v3  ;;  %262 = vmatpush.msra.mxu0 %v228_v3 }
  0x39   : > { %455 = vmatpush.msra.mxu2 %v228_v3  ;;  %p649_p4 = pnand %p648_p1, %p797_p3  ;;  %p654_p2 = por %p653_p9, %p652_p11 }
  0x3a   : > { %458 = vmatpush.msra.mxu3 %v227_v4  ;;  %263 = vmatpush.msra.mxu0 %v227_v4 }
  0x3b   : > { %442 = vmatmul.msk.f32.vlgmr.msra.gmra.mxu3 %vm232_vm0, %v224_v5  ;;  %457 = vmatpush.msra.mxu2 %v227_v4  ;;  %p650_p8 = pneg %p649_p4 }
  0x3c   : > { %439 = vmatmul.msk.f32.vlgmr.msra.gmra.mxu0 %vm232_vm0, %v221_v6  ;;  %441 = vmatmul.msk.f32.vlgmr.msra.gmra.mxu2 %vm232_vm0, %v223_v7 }
  0x3d   : > { %p655_p10 = pnand %p654_p2, %p650_p8 }
  0x43   : > { %443 = vmatmul.msk.f32.gmra.mxu3 %vm232_vm0, %v225_v8 }
  0x44   : > { %440 = vmatmul.msk.f32.gmra.mxu0 %vm232_vm0, %v222_v9 }
  0xb9   : > { %v265_v10 = vpop.f32.mrf.mxu0 }
  0xba   : > { %v280_v21 = vand.u32 2147483647, %v265_v10 }
  0xbc   : > { %v285_v24 = vadd.f32 1e-15, %v280_v21 }
  0xbe   : > { %v274_v11 = vpop.f32.mrf.mxu3 }
  0xbf   : > { %v271_v12 = vpop.f32.mrf.mxu2  ;;  %v283_v13 = vand.u32 2147483647, %v274_v11 }
  0xc0   : > { %v282_v14 = vand.u32 2147483647, %v271_v12 }
  0xc1   : > { %v268_v15 = vpop.f32.mrf.mxu0  ;;  %v288_v16 = vadd.f32 1e-15, %v283_v13 }
  0xc2   : > { %v281_v17 = vand.u32 2147483647, %v268_v15  ;;  %v287_v19 = vadd.f32 1e-15, %v282_v14 }
  0xc3   : > { %531 = vlog2.f32 %v288_v16 }
  0xc4   : > { %v286_v23 = vadd.f32 1e-15, %v281_v17  ;;  %533 = vlog2.f32 %v287_v19 }
  0xc6   : > { %v277_v18 = vpop.f32.mrf.mxu3 }
  0xc7   : > { %v284_v20 = vand.u32 2147483647, %v277_v18 }
  0xc9   : > { %v289_v22 = vadd.f32 1e-15, %v284_v20  ;;  %v532_v25 = vpop.eup %531 }
  0xca   : > { %v534_v26 = vpop.eup %533  ;;  %v297_v30 = vmul.f32 0.6931472, %v532_v25 }
  0xcb   : > { %535 = vlog2.f32 %v289_v22  ;;  %v295_v31 = vmul.f32 0.6931472, %v534_v26 }
  0xcc   : > { %537 = vlog2.f32 %v286_v23 }
  0xcd   : > { %539 = vlog2.f32 %v285_v24 }
  0xd1   : > { %v536_v27 = vpop.eup %535 }
  0xd2   : > { %v299_v28 = vmul.f32 0.6931472, %v536_v27  ;;  %v538_v29 = vpop.eup %537 }
  0xd3   : > { %v293_v32 = vmul.f32 0.6931472, %v538_v29  ;;  %v540_v33 = vpop.eup %539 }
  0xd4   : > { %314 = vmatpush.msra.mxu1 %v299_v28  ;;  %v291_v34 = vmul.f32 0.6931472, %v540_v33 }
  0xd6   : > { %315 = vmatpush.msra.mxu1 %v297_v30 }
  0xd8   : > { %316 = vmatpush.msra.mxu1 %v295_v31 }
  0xda   : > { %317 = vmatpush.msra.mxu1 %v293_v32 }
  0xdc   : > { %318 = vmatpush.msra.mxu1 %v291_v34 }
  0xdd   : > { %444 = vmatmul.msk.f32.vlgmr.msra.gmra.mxu1 %vm232_vm0, %v226_v35 }
 0x15a   : > { %v320_v36 = vpop.f32.mrf.mxu1 }
 0x15b   : > { %323 = vst [vmem:[%s220_s28] sm:$0xff] %v320_v36 }
 0x15c   : > { %658 = shalt.err (!%p655_p10)
}
 0x15d   : > { %471 = dma.vmem_to_hbm [thread:$0]  (%p797_p3), %s338_s4, 128, %s340_s7, %s325_s8  }
 0x15e PF: > { %s351_s29 = sand.u32 1, %s689_s12   ;;  %p892_p12 = scmp.ge.s32.totalorder %s701_s15, 2 }
 0x15f   : > { %s352_s27 = scalar_lea.sflag [#allocation4], %s351_s29 }
 0x160   : > { %p485_p13 = pnand %p892_p12, %p763_p6 }
 0x162   : > { %p486_p0 = pneg %p485_p13 }
 0x164   : > { %684 = dma.done.wait (%p486_p0), %s352_s27, 128  }
 0x165   : > { %686 = vsyncadd (%p486_p0), %s352_s27, 4294967168  ;;  %p17_p5 = scmp.ge.s32.totalorder %s787_s6, 4   ;;  %s893_s12 = smov %s693_s13 }
 0x166   : > { %s894_s13 = smov %s697_s14  ;;  %s895_s14 = smov %s803_s10 }
 0x167   : > { %s896_s15 = smov %s787_s6  ;;  %19 = sbr.rel (!%p17_p5) target bundleno = 6 (0x6), region = 85 }
 0x16c   :  { %358 = vsyncpa [#allocation3], 1 }
 0x16d   :  { %360 = vsyncpa [#allocation3 + $0x1], 1 }
 0x16e   :  { %361 = vsyncpa [#allocation6], 1 }
 0x16f   :  { %362 = vsyncpa [#allocation4], 1 }
 0x170   :  { %364 = vsyncpa [#allocation4 + $0x1], 1 }

</bundles_post_ra>
